<compile_context>
chip_gen: v7x
topology: tpu7x:2x2x1
jax: 0.10.0
libtpu: 0.0.40
codegen_flags: <defaults>
</compile_context>

<pallas_src>
import functools

import jax
import jax.numpy as jnp
from jax import lax
from jax.experimental import pallas as pl
from jax.experimental.pallas import tpu as pltpu


# ---------------------------------------------------------------------------
# helpers
# ---------------------------------------------------------------------------
def _vmem_limit(estimated_bytes):
    # Cap at 48 MiB: v7x has only 64 MiB physical VMEM per TC, so leave
    # headroom for compiler-internal scratch; floor at 16 MiB for pipelining.
    return int(min(48 * 1024 * 1024, max(2 * estimated_bytes, 16 * 1024 * 1024)))


def _tile_targets():
    """Per-generation (tq, tk) targets.

    v5e: 128-wide key tiles keep the (tq, tk) f32 score tile inside the vreg
         file (single vst slot, 4x128^2 MXU still saturated).
    v6e/v7x: ridge for streamed K/V is ~650 / ~310 flops/byte, so tq >= 512
         keeps the kernel MXU-bound; 256-wide tiles match the 2x256^2 MXU.
    """
    try:
        kind = jax.devices()[0].device_kind.lower()
    except Exception:  # pragma: no cover - defensive
        kind = ""
    if "v5" in kind:
        return 256, 128
    return 512, 256  # v6e / v7x / default


def _pick_tiles(n):
    """Return (tq, tk, padded_n).  Never hands back an unbounded tile."""
    tq_t, tk_t = _tile_targets()
    if n <= max(tq_t, tk_t):
        # Single tile per axis (block == full dim); no padding / masking needed.
        return n, n, n
    g = max(tq_t, tk_t)  # tk_t divides tq_t, so g is divisible by both
    n_pad = ((n + g - 1) // g) * g
    return tq_t, tk_t, n_pad


# ---------------------------------------------------------------------------
# Stage 1: fused QKV projection (runs exactly once per token).
# ---------------------------------------------------------------------------
def _qkv_project_kernel(x_ref, w_ref, b_ref, q_ref, k_ref, v_ref, *, scale, D):
    # (tn, D) @ (D, 3D): bf16 MXU operands, f32 accumulation.  One fused pass
    # instead of three D-wide passes improves MXU fill when D < 256.
    qkv = jnp.dot(x_ref[...], w_ref[...],
                  preferred_element_type=jnp.float32) + b_ref[...]
    # Fold the softmax scale into Q: (tn, D) multiplies instead of (tq, tk).
    q_ref[...] = (qkv[:, :D] * scale).astype(q_ref.dtype)
    k_ref[...] = qkv[:, D:2 * D].astype(k_ref.dtype)
    v_ref[...] = qkv[:, 2 * D:].astype(v_ref.dtype)


def _qkv_project(x_bf, w_fused, b_fused, *, scale, tn):
    B, Np, D = x_bf.shape
    sq = pl.Squeezed()
    # TODO(synk): for D >= ~3k the resident fused (D, 3D) bf16 weight (6*D^2
    # bytes) no longer fits v7x's 64 MiB VMEM; block it over output columns.
    vmem_resident = pl.BlockSpec(memory_space=pltpu.MemorySpace.VMEM)
    kernel = functools.partial(_qkv_project_kernel, scale=scale, D=D)

    est = (2 * tn * D * 2          # x block, double-buffered (bf16)
           + 3 * D * D * 2         # fused weight, resident (bf16)
           + 3 * D * 4             # fused bias, resident (f32)
           + 3 * 2 * tn * D * 2)   # q/k/v out blocks, double-buffered (bf16)

    out_sds = jax.ShapeDtypeStruct((B, Np, D), jnp.bfloat16)
    return pl.pallas_call(
        kernel,
        out_shape=(out_sds, out_sds, out_sds),
        grid_spec=pltpu.PrefetchScalarGridSpec(
            num_scalar_prefetch=0,
            grid=(B, Np // tn),
            in_specs=[
                pl.BlockSpec((sq, tn, D), lambda b, i: (b, i, 0)),  # x
                vmem_resident,   # fused (D, 3D) weight
                vmem_resident,   # fused (1, 3D) bias
            ],
            out_specs=[
                pl.BlockSpec((sq, tn, D), lambda b, i: (b, i, 0)),  # q (scaled)
                pl.BlockSpec((sq, tn, D), lambda b, i: (b, i, 0)),  # k
                pl.BlockSpec((sq, tn, D), lambda b, i: (b, i, 0)),  # v
            ],
        ),
        compiler_params=pltpu.CompilerParams(
            dimension_semantics=("parallel", "parallel"),
            vmem_limit_bytes=_vmem_limit(est),
        ),
    )(x_bf, w_fused, b_fused)


# ---------------------------------------------------------------------------
# Stage 2: flash-style attention over the pre-projected q/k/v tiles.
# ---------------------------------------------------------------------------
def _flash_attn_kernel(q_ref, k_ref, v_ref, o_ref, m_sc, l_sc, acc_sc,
                       *, tk, n_valid, masked):
    ki = pl.program_id(2)

    # --- init per (batch, query-tile): reset online-softmax state.
    @pl.when(ki == 0)
    def _():
        m_sc[...] = jnp.full_like(m_sc, -jnp.inf)
        l_sc[...] = jnp.zeros_like(l_sc)
        acc_sc[...] = jnp.zeros_like(acc_sc)

    # --- scores: contract last dims directly (no explicit K transpose).
    s = lax.dot_general(q_ref[...], k_ref[...],
                        dimension_numbers=(((1,), (1,)), ((), ())),
                        preferred_element_type=jnp.float32)          # (tq, tk)

    if masked:  # static python bool: only traced when N was padded
        key_idx = ki * tk + lax.broadcasted_iota(jnp.int32, (1, tk), 1)
        s = jnp.where(key_idx < n_valid, s, -jnp.inf)

    # --- online softmax update (f32 on the VPU/EUP).
    m_new = jnp.maximum(m_sc[...], jnp.max(s, axis=-1, keepdims=True))
    alpha = jnp.exp(m_sc[...] - m_new)
    p = jnp.exp(s - m_new)
    l_sc[...] = alpha * l_sc[...] + jnp.sum(p, axis=-1, keepdims=True)
    acc_sc[...] = alpha * acc_sc[...] + jnp.dot(
        p.astype(v_ref.dtype), v_ref[...], preferred_element_type=jnp.float32)
    m_sc[...] = m_new

    # --- finalize on the last key tile.
    @pl.when(ki == pl.num_programs(2) - 1)
    def _():
        o_ref[...] = (acc_sc[...] *
                      pl.reciprocal(l_sc[...], approx=True)).astype(o_ref.dtype)


def _flash_attention(q, k, v, out_dtype, *, tq, tk, n_valid):
    B, Np, D = q.shape
    masked = (Np != n_valid)
    sq = pl.Squeezed()
    kernel = functools.partial(_flash_attn_kernel, tk=tk, n_valid=n_valid,
                               masked=masked)

    est = (2 * tq * D * 2          # q block, double-buffered (bf16)
           + 2 * 2 * tk * D * 2    # k + v blocks, double-buffered (bf16)
           + 2 * tq * D * 4        # out block, double-buffered (f32)
           + 2 * tq * 4            # m / l scratch (f32)
           + tq * D * 4)           # accumulator scratch (f32)

    return pl.pallas_call(
        kernel,
        out_shape=jax.ShapeDtypeStruct((B, Np, D), out_dtype),
        grid_spec=pltpu.PrefetchScalarGridSpec(
            num_scalar_prefetch=0,
            grid=(B, Np // tq, Np // tk),
            in_specs=[
                pl.BlockSpec((sq, tq, D), lambda b, qi, ki: (b, qi, 0)),  # q
                pl.BlockSpec((sq, tk, D), lambda b, qi, ki: (b, ki, 0)),  # k
                pl.BlockSpec((sq, tk, D), lambda b, qi, ki: (b, ki, 0)),  # v
            ],
            out_specs=pl.BlockSpec((sq, tq, D), lambda b, qi, ki: (b, qi, 0)),
            scratch_shapes=[
                pltpu.VMEM((tq, 1), jnp.float32),   # running max
                pltpu.VMEM((tq, 1), jnp.float32),   # running sum
                pltpu.VMEM((tq, D), jnp.float32),   # output accumulator
            ],
        ),
        compiler_params=pltpu.CompilerParams(
            dimension_semantics=("parallel", "parallel", "arbitrary"),
            vmem_limit_bytes=_vmem_limit(est),
        ),
    )(q, k, v)


# ---------------------------------------------------------------------------
# Public wrapper (mirrors the PyTorch forward).
# ---------------------------------------------------------------------------
def self_attention(x, weight, bias, head_numb):
    """x: (B, N, D) float32.  weight: (3D, D) torch nn.Linear layout.  bias: (3D,)."""
    B, N, D = x.shape
    assert weight.shape == (3 * D, D)
    assert bias.shape == (3 * D,)

    # NOTE: matching the PyTorch module exactly, head_numb only enters through
    # the softmax scale; attention is single-head over the full D.
    scale = (D / head_numb) ** (-0.5)

    # torch Linear computes x @ W^T + b.  Keep the fused (D, 3D) layout so the
    # projection is a single MXU pass per token tile.
    w_fused = weight.T.astype(jnp.bfloat16)                 # (D, 3D)
    b_fused = bias.reshape(1, 3 * D).astype(jnp.float32)    # (1, 3D)

    tq, tk, n_pad = _pick_tiles(N)
    x_bf = x.astype(jnp.bfloat16)
    if n_pad != N:
        # Zero-pad the sequence; padded keys are masked to -inf in the kernel
        # and padded query rows are sliced off below.
        x_bf = jnp.pad(x_bf, ((0, 0), (0, n_pad - N), (0, 0)))

    tn = tq  # projection sequence tile (tq always divides the padded length)
    q, k, v = _qkv_project(x_bf, w_fused, b_fused, scale=scale, tn=tn)
    out = _flash_attention(q, k, v, x.dtype, tq=tq, tk=tk, n_valid=N)
    if n_pad != N:
        out = out[:, :N, :]
    return out


def _reference(x, weight, bias, head_numb):
    """Pure-JAX f32 reference mirroring the PyTorch forward exactly."""
    B, N, D = x.shape
    qkv = jnp.einsum("bnd,od->bno", x, weight) + bias        # torch Linear: x @ W^T + b
    q = qkv[:, :, :D]
    k = qkv[:, :, D:2 * D]
    v = qkv[:, :, 2 * D:]
    scale = (D / head_numb) ** (-0.5)
    scores = jnp.einsum("bqd,bkd->bqk", q, k) * scale
    attn = jax.nn.softmax(scores, axis=2)
    return jnp.einsum("bqk,bkd->bqd", attn, v)


if __name__ == "__main__":
    B, N, D = 2, 8, 32
    head_numb = 4

    key = jax.random.PRNGKey(0)
    kx, kw, kb = jax.random.split(key, 3)

    x = jax.random.normal(kx, (B, N, D), dtype=jnp.float32)
    # Deterministic init mimicking nn.Linear(D, 3D): uniform(-1/sqrt(D), 1/sqrt(D))
    bound = 1.0 / (D ** 0.5)
    weight = jax.random.uniform(kw, (3 * D, D), minval=-bound, maxval=bound,
                                dtype=jnp.float32)
    bias = jax.random.uniform(kb, (3 * D,), minval=-bound, maxval=bound,
                              dtype=jnp.float32)

    out = self_attention(x, weight, bias, head_numb)
    out = jax.block_until_ready(out)

    ref = _reference(x, weight, bias, head_numb)
    assert out.shape == (B, N, D)
    # bf16 MXU operands + approx reciprocal -> compare at bf16-level tolerance.
    assert jnp.allclose(out, ref, atol=5e-2, rtol=5e-2), "mismatch vs reference"

    print("KERNEL_OK")
</pallas_src>

<mosaic_0001>
module attributes {stable_mosaic.version = 11 : i64} {
  func.func @_qkv_project_kernel(%arg0: i32, %arg1: i32, %arg2: memref<1x8x32xbf16, #tpu.memory_space<vmem>>, %arg3: memref<32x96xbf16, #tpu.memory_space<vmem>>, %arg4: memref<1x96xf32, #tpu.memory_space<vmem>>, %arg5: memref<1x8x32xbf16, #tpu.memory_space<vmem>>, %arg6: memref<1x8x32xbf16, #tpu.memory_space<vmem>>, %arg7: memref<1x8x32xbf16, #tpu.memory_space<vmem>>) attributes {dimension_semantics = [#tpu.dimension_semantics<parallel>, #tpu.dimension_semantics<parallel>], iteration_bounds = array<i64: 2, 1>, scalar_prefetch = 0 : i64, scratch_operands = 0 : i64, tpu.core_type = #tpu.core_type<tc>, window_params = [{transform_indices = @transform_0, window_bounds = array<i64: 1, 8, 32>}, {pipeline_mode = #tpu.pipeline_mode<synchronous>, transform_indices = @transform_1, window_bounds = array<i64: 32, 96>}, {pipeline_mode = #tpu.pipeline_mode<synchronous>, transform_indices = @transform_2, window_bounds = array<i64: 1, 96>}, {transform_indices = @transform_3, window_bounds = array<i64: 1, 8, 32>}, {transform_indices = @transform_4, window_bounds = array<i64: 1, 8, 32>}, {transform_indices = @transform_5, window_bounds = array<i64: 1, 8, 32>}]} {
    %c0 = arith.constant 0 : index
    %c0_0 = arith.constant 0 : index
    %c0_1 = arith.constant 0 : index
    %0 = vector.load %arg2[%c0, %c0_0, %c0_1] : memref<1x8x32xbf16, #tpu.memory_space<vmem>>, vector<1x8x32xbf16>
    %1 = vector.shape_cast %0 : vector<1x8x32xbf16> to vector<8x32xbf16>
    %c0_2 = arith.constant 0 : index
    %c0_3 = arith.constant 0 : index
    %2 = vector.load %arg3[%c0_2, %c0_3] : memref<32x96xbf16, #tpu.memory_space<vmem>>, vector<32x96xbf16>
    %cst = arith.constant dense<0.000000e+00> : vector<8x96xf32>
    %3 = tpu.matmul %1, %2, %cst {dimension_numbers = #tpu.dot_dimension_numbers<[1], [0], [0], [1], [0, 0, 1, 1], [], []>} : vector<8x32xbf16>, vector<32x96xbf16>, vector<8x96xf32> -> vector<8x96xf32>
    %c0_4 = arith.constant 0 : index
    %c0_5 = arith.constant 0 : index
    %4 = vector.load %arg4[%c0_4, %c0_5] : memref<1x96xf32, #tpu.memory_space<vmem>>, vector<1x96xf32>
    %5 = vector.broadcast %4 : vector<1x96xf32> to vector<8x96xf32>
    %6 = arith.addf %3, %5 : vector<8x96xf32>
    %7 = vector.extract_strided_slice %6 {offsets = [0, 0], sizes = [8, 32], strides = [1, 1]} : vector<8x96xf32> to vector<8x32xf32>
    %cst_6 = arith.constant 0.353553385 : f32
    %8 = vector.broadcast %cst_6 : f32 to vector<8x32xf32>
    %9 = arith.mulf %7, %8 : vector<8x32xf32>
    %10 = arith.truncf %9 : vector<8x32xf32> to vector<8x32xbf16>
    %c0_7 = arith.constant 0 : index
    %c0_8 = arith.constant 0 : index
    %c0_9 = arith.constant 0 : index
    %11 = vector.load %arg5[%c0_7, %c0_8, %c0_9] : memref<1x8x32xbf16, #tpu.memory_space<vmem>>, vector<1x8x32xbf16>
    %12 = vector.shape_cast %11 : vector<1x8x32xbf16> to vector<8x32xbf16>
    %13 = vector.shape_cast %10 : vector<8x32xbf16> to vector<1x8x32xbf16>
    tpu.vector_store %arg5[%c0_7, %c0_8, %c0_9], %13 {strides = array<i32>} : memref<1x8x32xbf16, #tpu.memory_space<vmem>>, vector<1x8x32xbf16>,
    %14 = vector.extract_strided_slice %6 {offsets = [0, 32], sizes = [8, 32], strides = [1, 1]} : vector<8x96xf32> to vector<8x32xf32>
    %15 = arith.truncf %14 : vector<8x32xf32> to vector<8x32xbf16>
    %c0_10 = arith.constant 0 : index
    %c0_11 = arith.constant 0 : index
    %c0_12 = arith.constant 0 : index
    %16 = vector.load %arg6[%c0_10, %c0_11, %c0_12] : memref<1x8x32xbf16, #tpu.memory_space<vmem>>, vector<1x8x32xbf16>
    %17 = vector.shape_cast %16 : vector<1x8x32xbf16> to vector<8x32xbf16>
    %18 = vector.shape_cast %15 : vector<8x32xbf16> to vector<1x8x32xbf16>
    tpu.vector_store %arg6[%c0_10, %c0_11, %c0_12], %18 {strides = array<i32>} : memref<1x8x32xbf16, #tpu.memory_space<vmem>>, vector<1x8x32xbf16>,
    %19 = vector.extract_strided_slice %6 {offsets = [0, 64], sizes = [8, 32], strides = [1, 1]} : vector<8x96xf32> to vector<8x32xf32>
    %20 = arith.truncf %19 : vector<8x32xf32> to vector<8x32xbf16>
    %c0_13 = arith.constant 0 : index
    %c0_14 = arith.constant 0 : index
    %c0_15 = arith.constant 0 : index
    %21 = vector.load %arg7[%c0_13, %c0_14, %c0_15] : memref<1x8x32xbf16, #tpu.memory_space<vmem>>, vector<1x8x32xbf16>
    %22 = vector.shape_cast %21 : vector<1x8x32xbf16> to vector<8x32xbf16>
    %23 = vector.shape_cast %20 : vector<8x32xbf16> to vector<1x8x32xbf16>
    tpu.vector_store %arg7[%c0_13, %c0_14, %c0_15], %23 {strides = array<i32>} : memref<1x8x32xbf16, #tpu.memory_space<vmem>>, vector<1x8x32xbf16>,
    return
  }
  func.func @transform_0(%arg0: i32, %arg1: i32) -> (i32, i32, i32) {
    %c0_i32 = arith.constant 0 : i32
    %c0_i32_0 = arith.constant 0 : i32
    return %arg0, %arg1, %c0_i32 : i32, i32, i32
  }
  func.func @transform_1(%arg0: i32, %arg1: i32) -> (i32, i32) {
    %c0_i32 = arith.constant 0 : i32
    %c0_i32_0 = arith.constant 0 : i32
    %c0_i32_1 = arith.constant 0 : i32
    return %c0_i32, %c0_i32_0 : i32, i32
  }
  func.func @transform_2(%arg0: i32, %arg1: i32) -> (i32, i32) {
    %c0_i32 = arith.constant 0 : i32
    %c0_i32_0 = arith.constant 0 : i32
    %c0_i32_1 = arith.constant 0 : i32
    return %c0_i32, %c0_i32_0 : i32, i32
  }
  func.func @transform_3(%arg0: i32, %arg1: i32) -> (i32, i32, i32) {
    %c0_i32 = arith.constant 0 : i32
    %c0_i32_0 = arith.constant 0 : i32
    return %arg0, %arg1, %c0_i32 : i32, i32, i32
  }
  func.func @transform_4(%arg0: i32, %arg1: i32) -> (i32, i32, i32) {
    %c0_i32 = arith.constant 0 : i32
    %c0_i32_0 = arith.constant 0 : i32
    return %arg0, %arg1, %c0_i32 : i32, i32, i32
  }
  func.func @transform_5(%arg0: i32, %arg1: i32) -> (i32, i32, i32) {
    %c0_i32 = arith.constant 0 : i32
    %c0_i32_0 = arith.constant 0 : i32
    return %arg0, %arg1, %c0_i32 : i32, i32, i32
  }
}

</mosaic_0001>

<bundles_post_ra>
// kernel: tpu_custom_call.1
= control target key start
LH: loop header
LB: loop body
LE: loop exit
PB: predicated region body
PF: predicated region fallthrough
CT: control target
= control target key end

     0   :  { %11 = vsyncpa [#allocation3], 0  ;;  %s1260_s0 = inlined_call_operand.hbm [shape: bf16[2,8,32], index: 0, kind: input, shape index: {}]   ;;  %s1261_s1 = inlined_call_operand.hbm [shape: bf16[32,96], index: 1, kind: input, shape index: {}]   ;;  %s1262_s2 = inlined_call_operand.vmem [shape: f32[1,96], index: 2, kind: input, shape index: {}]   ;;  %s1263_s3 = inlined_call_operand.hbm [shape: bf16[2,8,32], index: 3, kind: output, shape index: {0}]   ;;  %s1264_s4 = inlined_call_operand.hbm [shape: bf16[2,8,32], index: 4, kind: output, shape index: {1}]   ;;  %s1265_s5 = inlined_call_operand.hbm [shape: bf16[2,8,32], index: 5, kind: output, shape index: {2}]  }
   0x1   :  { %13 = vsyncpa [#allocation3 + $0x1], 0 }
   0x2   :  { %14 = vsyncpa [#allocation6], 0 }
   0x3   :  { %15 = vsyncpa [#allocation4], 0 }
   0x4   :  { %17 = vsyncpa [#allocation4 + $0x1], 0 }
   0x5   :  { %18 = vsyncpa [#allocation9], 0 }
   0x6   :  { %20 = vsyncpa [#allocation9 + $0x1], 0  ;;  %s961_s18 = smov 0   ;;  %s963_s19 = smov 0  }
   0x7   :  { %s965_s20 = smov 0   ;;  %s967_s21 = smov 0  }
   0x8   :  { %s969_s22 = smov 0   ;;  %s971_s23 = smov 0  }
   0x9 LB: > { %s992_s24 = sadd.s32 4294967295, %s918_s23   ;;  %s1269_s25 = sadd.s32 4294967294, %s918_s23   ;;  %s918_s23 = sphi %s971_s23, %s26_s23   ;;  %s914_s22 = sphi %s969_s22, %s1289_s22   ;;  %s910_s21 = sphi %s967_s21, %s1288_s21   ;;  %s906_s20 = sphi %s965_s20, %s1287_s20   ;;  %s902_s19 = sphi %s963_s19, %s1286_s19   ;;  %s898_s18 = sphi %s961_s18, %s1285_s18  }
   0xa   : > { %p60_p0 = scmp.ne.s32.totalorder %s902_s19, %s898_s18  ;;  %p1266_p1 = scmp.eq.s32.totalorder %s992_s24, 0 }
   0xb   : > { %p134_p3 = scmp.eq.s32.totalorder %s1269_s25, 1  ;;  %p587_p5 = scmp.ge.s32.totalorder %s918_s23, 1 }
   0xc   : > { %p1003_p4 = por %p1266_p1, %p60_p0  ;;  %p197_p7 = scmp.lt.s32.totalorder %s918_s23, 3 }
   0xd   : > { %p1008_p6 = por %p134_p3, %p60_p0  ;;  %s920_s29 = smov [#allocation5]  }
   0xe   : > { %s1270_s26 = scalar_select %p1003_p4, 1, 0 }
   0xf   : > { %s1271_s27 = scalar_select %p1008_p6, 1, 0 }
  0x10   : > { %p1013_p8 = pnand %p587_p5, %p197_p7  ;;  %s209_s30 = sshll.u32 %s920_s29, 4  ;;  %s210_s30 = int_to_ptr.vmem [resolvable:$true] %s209_s30 }
  0x11   : > { %s38_s7 = sadd.s32 1, %s914_s22  ;;  %s714_s10 = scalar_lea.hbm %s1261_s1, 256 }
  0x12   : > { %s1272_s28 = scalar_select %p1013_p8, 1, 0 }
  0x13   : > { %p635_p9 = pneg %p1013_p8  ;;  %p715_p12 = scmp.ne.s32.totalorder %s1261_s1, %s714_s10 }
  0x14   : > { %p721_p5 = scmp.lt.u32.totalorder %s714_s10, %s1261_s1 }
  0x15   : > { %p1022_p11 = pnand %p635_p9, %p1266_p1 }
  0x17   : > { %p716_p13 = pneg %p1022_p11 }
  0x19   : > { %p717_p0 = pnand %p716_p13, %p715_p12 }
  0x1b   : > { %p718_p3 = pneg %p717_p0 }
  0x1d   : > { %p723_p7 = pnand %p721_p5, %p718_p3 }
  0x1f   : > { %726 = shalt.err (!%p723_p7)
}
  0x20   : > { %s727_s15 = scalar_lea.vmem %s210_s30, 256  ;;  %p735_p2 = scmp.lt.s32.totalorder %s210_s30, %s210_s30 }
  0x21   : > { %p728_p9 = scmp.ne.s32.totalorder %s210_s30, %s727_s15  ;;  %p736_p6 = scmp.lt.s32.totalorder %s727_s15, %s727_s15 }
  0x23   : > { %p730_p10 = pnand %p728_p9, %p716_p13  ;;  %p737_p4 = por %p736_p6, %p735_p2 }
  0x25   : > { %p731_p1 = pneg %p730_p10 }
  0x27   : > { %p738_p8 = pnand %p737_p4, %p731_p1 }
  0x29   : > { %741 = shalt.err (!%p738_p8)
}
  0x2a   : > { %s921_s16 = smov 64   ;;  %s922_s17 = smov 4  }
  0x2b   : > { %638 = dma.hbm_to_vmem [thread:$0]  (!%p1022_p11), %s1261_s1, 256, %s210_s30, [#allocation6], %s921_s16, %s921_s16, %s922_s17  }
  0x2c   : > { %p40_p1 = scmp.ge.s32.totalorder %s38_s7, 2  ;;  %s47_s9 = sadd.s32 1, %s906_s20 }
  0x2d   : > { %p54_p2 = scmp.ne.s32.totalorder %s906_s20, %s902_s19  ;;  %p55_p4 = scmp.eq.s32.totalorder %s918_s23, 0 }
  0x2e   : > { %s1291_s7 = smov (%p40_p1, %s38_s7), 0  ;;  %p1275_p8 = scmp.eq.s32.totalorder %s992_s24, 1 }
  0x2f   : > { %p1049_p6 = por %p55_p4, %p54_p2  ;;  %s42_s6 = ssub.s32 %s914_s22, %s1291_s7 }
  0x30   : > { %p1055_p10 = por %p1275_p8, %p54_p2  ;;  %p654_p12 = scmp.lt.s32.totalorder %s918_s23, 2 }
  0x31   : > { %p45_p11 = scmp.eq.s32.totalorder %s42_s6, 0  ;;  %s226_s30 = sand.u32 1, %s906_s20  }
  0x32   : > { %s590_s12 = sshll.u32 %s226_s30, 2  ;;  %s591_s14 = sshll.u32 %s914_s22, 6 }
  0x33   : > { %s1064_s13 = scalar_select %p45_p11, %s906_s20, %s47_s9  }
  0x34   : > { %s1070_s17 = scalar_lea.hbm %s1260_s0, %s591_s14  ;;  %s230_s29 = scalar_lea.vmem [#allocation2], %s590_s12 }
  0x35   : > { %s238_s8 = sshll.u32 %s230_s29, 4  ;;  %p1076_p13 = pnand %p654_p12, %p1049_p6  ;;  %s1072_s8 = int_to_ptr.vmem [resolvable:$true] %s238_s8 }
  0x36   : > { %s227_s9 = scalar_lea.sflag [#allocation3], %s226_s30  ;;  %s742_s25 = scalar_lea.hbm %s1070_s17, 64 }
  0x37   : > { %p743_p0 = scmp.ne.s32.totalorder %s1070_s17, %s742_s25  ;;  %p744_p3 = pneg %p1076_p13 }
  0x38   : > { %s747_s15 = scalar_lea.hbm %s1260_s0, 128  ;;  %p748_p9 = scmp.lt.u32.totalorder %s1070_s17, %s1260_s0 }
  0x39   : > { %p745_p5 = pnand %p744_p3, %p743_p0  ;;  %p749_p1 = scmp.lt.u32.totalorder %s747_s15, %s742_s25 }
  0x3a   : > { %p751_p4 = scmp.lt.u32.totalorder %s742_s25, %s1070_s17 }
  0x3b   : > { %p746_p7 = pneg %p745_p5  ;;  %p750_p2 = por %p749_p1, %p748_p9 }
  0x3d   : > { %p752_p6 = por %p751_p4, %p750_p2 }
  0x3f   : > { %p753_p8 = pnand %p752_p6, %p746_p7 }
  0x41   : > { %756 = shalt.err (!%p753_p8)
}
  0x42   : > { %s757_s30 = scalar_lea.vmem %s1072_s8, 64  ;;  %s923_s29 = smov [#allocation2]  }
  0x43   : > { %p758_p12 = scmp.ne.s32.totalorder %s1072_s8, %s757_s30  ;;  %s762_s12 = sshll.u32 %s923_s29, 4  ;;  %s763_s12 = int_to_ptr.vmem [resolvable:$false] %s762_s12 }
  0x44   : > { %s764_s14 = scalar_lea.vmem %s763_s12, 128  ;;  %p765_p5 = scmp.lt.s32.totalorder %s1072_s8, %s763_s12 }
  0x45   : > { %p760_p11 = pnand %p758_p12, %p744_p3  ;;  %p766_p9 = scmp.lt.s32.totalorder %s764_s14, %s757_s30 }
  0x47   : > { %p761_p0 = pneg %p760_p11  ;;  %p767_p1 = por %p766_p9, %p765_p5 }
  0x49   : > { %p768_p2 = pnand %p767_p1, %p761_p0 }
  0x4b   : > { %771 = shalt.err (!%p768_p2)
}
  0x4c   : > { %642 = dma.hbm_to_vmem [thread:$0]  (!%p1076_p13), %s1070_s17, 64, %s1072_s8, %s227_s9  }
  0x4d   : > { %p1278_p7 = scmp.ne.s32.totalorder %s1272_s28, 0 }
  0x4e   : > { %s1108_s25 = sand.u32 (!%p1278_p7), 1, %s902_s19   ;;  %p1279_p3 = scmp.ne.s32.totalorder (!%p1278_p7), %s1270_s26, 0 }
  0x4f   : > { %247 = sbr.rel (%p1278_p7) target bundleno = 467 (0x1d3), region = 32  ;;  %s1111_s15 = sshll.u32 (!%p1278_p7), %s1108_s25, 2 }
  0x50   : > { %s250_s10 = scalar_lea.sflag (!%p1278_p7), [#allocation3], %s1108_s25  ;;  %s253_s16 = scalar_lea.vmem (!%p1278_p7), [#allocation2], %s1111_s15 }
  0x56   : > { %881 = dma.done.wait (%p1279_p3), %s250_s10, 64  }
  0x57   : > { %883 = vsyncadd (%p1279_p3), %s250_s10, 4294967232  ;;  %p1280_p13 = scmp.eq.s32.totalorder %s992_s24, 0 }
  0x59   : > { %885 = dma.done.wait (%p1280_p13), [#allocation6], 256   ;;  %p1281_p4 = pmov %p1280_p13 }
  0x5a   : > { %v924_v0 = vmov 0.0   ;;  %vm925_vm0 = vmmov 0   ;;  %v712_v1 = vld [vmem:[#allocation5] sm:$0xff]   ;;  %v713_v2 = vld [vmem:[#allocation5 + $0x8] sm:$0xff]   ;;  %v295_v3 = vld [vmem:[%s253_s16] sm:$0xf] }
  0x5b   : > { %887 = vsyncadd (%p1281_p4), [#allocation6], 4294967040  ;;  %615 = vmatprep.subr.bf16.mxu0 %v924_v0  ;;  %619 = vmatprep.mubr.msk.bf16.mxu0 %vm925_vm0, %v924_v0  ;;  %vm319_vm1 = vcmask 261120   ;;  %v598_v4 = vld [vmem:[%s1262_s2] ss:$0 sm:$0xff]  ;;  %s1127_s17 = sshll.u32 %s910_s21, 6 }
  0x5c   : > { %616 = vmatpush3.bf16.msra.mxu0 %v712_v1  ;;  %s279_s8 = scalar_lea.vmem [#allocation7], %s1111_s15  ;;  %vm365_vm2 = vcmask 257024   ;;  %s926_s9 = smov 96  }
  0x5d   : > { %617 = vmatprep.subr.bf16.mxu0 %v924_v0  ;;  %s404_s6 = sshll.u32 %s279_s8, 4  ;;  %s1134_s12 = scalar_lea.hbm %s1263_s3, %s1127_s17  ;;  %s1136_s6 = int_to_ptr.vmem [resolvable:$true] %s404_s6 }
  0x5e   : > { %s380_s21 = scalar_lea.sflag [#allocation4], %s1108_s25  ;;  %s772_s14 = scalar_lea.vmem %s1136_s6, 64 }
  0x5f   : > { %p773_p6 = scmp.ne.s32.totalorder %s1136_s6, %s772_s14  ;;  %s927_s10 = smov [#allocation7]  }
  0x60   : > { %618 = vmatpush3.bf16.msra.mxu0 %v713_v2  ;;  %s776_s16 = sshll.u32 %s927_s10, 4  ;;  %s777_s16 = int_to_ptr.vmem [resolvable:$false] %s776_s16 }
  0x61   : > { %p774_p8 = pnand %p773_p6, %p1055_p10  ;;  %s778_s26 = scalar_lea.vmem %s777_s16, 128 }
  0x62   : > { %p779_p11 = scmp.lt.s32.totalorder %s1136_s6, %s777_s16  ;;  %p780_p0 = scmp.lt.s32.totalorder %s778_s26, %s772_s14 }
  0x63   : > { %620 = vmatmul.mubr.msk.bf16.vlgmr.msra.gmra.mrb[0].mxu0 %vm319_vm1, %v295_v3  ;;  %p775_p12 = pneg %p774_p8 }
  0x64   : > { %p781_p5 = por %p780_p0, %p779_p11 }
  0x66   : > { %p782_p9 = pnand %p781_p5, %p775_p12 }
 0x136   : > { %v357_v5 = vpop.f32.mrb[0].mxu0 }
 0x137   : > { %v358_v6 = vadd.f32 %v598_v4, %v357_v5  ;;  %v621_v7 = vpop.f32.mrb[1].mxu0 }
 0x138   : > { %v360_v8 = vpop.f32.mrb[2].mxu0 }
 0x139   : > { %v363_v9 = vmul.f32 0.35355338, %v358_v6  ;;  %v622_v10 = vpop.f32.mrb[3].mxu0  ;;  %v611_v11 = vpack.c.bf16 %v358_v6, %v358_v6 }
 0x13b   : > { %v364_v12 = vpack.c.bf16 %v363_v9, %v363_v9  ;;  %371 = vrot.lane.b32.xlu0 %v611_v11, %s926_s9 }
 0x13d   : > { %366 = vst.msk [vmem:[%s279_s8] sm:$0xf] %vm365_vm2, %v364_v12 }
 0x13e   : > { %785 = shalt.err (!%p782_p9)
}
 0x13f   : > { %s786_s25 = scalar_lea.hbm %s1134_s12, 64  ;;  %s790_s9 = scalar_lea.hbm %s1263_s3, 128 }
 0x140   : > { %p787_p1 = scmp.ne.s32.totalorder %s1134_s12, %s786_s25  ;;  %p791_p3 = scmp.lt.u32.totalorder %s1134_s12, %s1263_s3 }
 0x141   : > { %p792_p13 = scmp.lt.u32.totalorder %s790_s9, %s786_s25  ;;  %p794_p6 = scmp.lt.u32.totalorder %s786_s25, %s1134_s12 }
 0x142   : > { %p788_p2 = pnand %p787_p1, %p1055_p10 }
 0x143   : > { %p793_p4 = por %p792_p13, %p791_p3 }
 0x144   : > { %p789_p7 = pneg %p788_p2 }
 0x145   : > { %p795_p8 = por %p794_p6, %p793_p4 }
 0x147   : > { %p796_p12 = pnand %p795_p8, %p789_p7 }
 0x149   : > { %799 = shalt.err (!%p796_p12)
}
 0x14a   : > { %629 = dma.vmem_to_hbm [thread:$0]  (%p1055_p10), %s1136_s6, 64, %s1134_s12, %s380_s21  }
 0x14b   : > { %s928_s14 = smov 64   ;;  %s384_s10 = sand.u32 1, %s992_s24  }
 0x14c   : > { %375 = vrot.lane.b32.xlu0 %v611_v11, %s928_s14  ;;  %s286_s16 = scalar_lea.vmem [#allocation8], %s1111_s15  ;;  %s1167_s8 = scalar_lea.hbm %s1264_s4, %s1127_s17 }
 0x14d   : > { %s418_s26 = sshll.u32 %s286_s16, 4  ;;  %s293_s9 = scalar_lea.vmem [#allocation10], %s1111_s15  ;;  %s1169_s26 = int_to_ptr.vmem [resolvable:$true] %s418_s26 }
 0x14e   : > { %s1174_s30 = sshll.u32 %s293_s9, 4  ;;  %s1177_s24 = scalar_lea.sflag [#allocation9], %s384_s10  ;;  %s1208_s30 = int_to_ptr.vmem [resolvable:$true] %s1174_s30 }
 0x14f   : > { %s800_s6 = scalar_lea.vmem %s1169_s26, 64  ;;  %s929_s12 = smov [#allocation8]  }
 0x150   : > { %p801_p11 = scmp.ne.s32.totalorder %s1169_s26, %s800_s6  ;;  %s804_s21 = sshll.u32 %s929_s12, 4  ;;  %s805_s21 = int_to_ptr.vmem [resolvable:$false] %s804_s21 }
 0x151   : > { %s806_s29 = scalar_lea.vmem %s805_s21, 128  ;;  %p807_p9 = scmp.lt.s32.totalorder %s1169_s26, %s805_s21 }
 0x152   : > { %p802_p0 = pnand %p801_p11, %p1055_p10  ;;  %p808_p1 = scmp.lt.s32.totalorder %s806_s29, %s800_s6 }
 0x154   : > { %p803_p5 = pneg %p802_p0  ;;  %p809_p2 = por %p808_p1, %p807_p9 }
 0x156   : > { %p810_p7 = pnand %p809_p2, %p803_p5 }
 0x1ad   : > { %v372_v13 = vpop.permute.xlu0 %371 }
 0x1ae   : > { %374 = vst.msk [vmem:[%s286_s16] sm:$0xf] %vm365_vm2, %v372_v13 }
 0x1af   : > { %813 = shalt.err (!%p810_p7)
}
 0x1b0   : > { %s814_s14 = scalar_lea.hbm %s1167_s8, 64  ;;  %s818_s25 = scalar_lea.hbm %s1264_s4, 128 }
 0x1b1   : > { %p815_p3 = scmp.ne.s32.totalorder %s1167_s8, %s814_s14  ;;  %p819_p6 = scmp.lt.u32.totalorder %s1167_s8, %s1264_s4 }
 0x1b2   : > { %p820_p8 = scmp.lt.u32.totalorder %s818_s25, %s814_s14  ;;  %p822_p11 = scmp.lt.u32.totalorder %s814_s14, %s1167_s8 }
 0x1b3   : > { %p816_p13 = pnand %p815_p3, %p1055_p10 }
 0x1b4   : > { %p821_p12 = por %p820_p8, %p819_p6 }
 0x1b5   : > { %p817_p4 = pneg %p816_p13 }
 0x1b6   : > { %p823_p0 = por %p822_p11, %p821_p12 }
 0x1b8   : > { %p824_p5 = pnand %p823_p0, %p817_p4 }
 0x1ba   : > { %827 = shalt.err (!%p824_p5)
}
 0x1bb   : > { %630 = dma.vmem_to_hbm [thread:$0]  (%p1055_p10), %s1169_s26, 64, %s1167_s8, %s1177_s24  }
 0x1bc   : > { %s1205_s29 = scalar_lea.hbm %s1265_s5, %s1127_s17  ;;  %s828_s14 = scalar_lea.vmem %s1208_s30, 64 }
 0x1bd   : > { %p829_p9 = scmp.ne.s32.totalorder %s1208_s30, %s828_s14  ;;  %s930_s26 = smov [#allocation10]  }
 0x1be   : > { %v376_v14 = vpop.permute.xlu0 %375  ;;  %s832_s8 = sshll.u32 %s930_s26, 4  ;;  %s833_s8 = int_to_ptr.vmem [resolvable:$false] %s832_s8 }
 0x1bf   : > { %378 = vst.msk [vmem:[%s293_s9] sm:$0xf] %vm365_vm2, %v376_v14  ;;  %p830_p1 = pnand %p829_p9, %p1055_p10  ;;  %s834_s10 = scalar_lea.vmem %s833_s8, 128 }
 0x1c0   : > { %p835_p7 = scmp.lt.s32.totalorder %s1208_s30, %s833_s8  ;;  %p836_p3 = scmp.lt.s32.totalorder %s834_s10, %s828_s14 }
 0x1c1   : > { %p831_p2 = pneg %p830_p1 }
 0x1c2   : > { %p837_p13 = por %p836_p3, %p835_p7 }
 0x1c4   : > { %p838_p4 = pnand %p837_p13, %p831_p2 }
 0x1c6   : > { %841 = shalt.err (!%p838_p4)
}
 0x1c7   : > { %s842_s15 = scalar_lea.hbm %s1205_s29, 64  ;;  %s846_s16 = scalar_lea.hbm %s1265_s5, 128 }
 0x1c8   : > { %p843_p6 = scmp.ne.s32.totalorder %s1205_s29, %s842_s15  ;;  %p847_p11 = scmp.lt.u32.totalorder %s1205_s29, %s1265_s5 }
 0x1c9   : > { %p848_p0 = scmp.lt.u32.totalorder %s846_s16, %s842_s15  ;;  %p850_p9 = scmp.lt.u32.totalorder %s842_s15, %s1205_s29 }
 0x1ca   : > { %p844_p8 = pnand %p843_p6, %p1055_p10 }
 0x1cb   : > { %p849_p5 = por %p848_p0, %p847_p11 }
 0x1cc   : > { %p845_p12 = pneg %p844_p8 }
 0x1cd   : > { %p851_p1 = por %p850_p9, %p849_p5 }
 0x1cf   : > { %p852_p2 = pnand %p851_p1, %p845_p12 }
 0x1d1   : > { %855 = shalt.err (!%p852_p2)
}
 0x1d2   : > { %631 = dma.vmem_to_hbm [thread:$0]  (%p1055_p10), %s1208_s30, 64, %s1205_s29, %s1177_s24  }
 0x1d3 PF: > { %s444_s12 = sand.u32 1, %s898_s18   ;;  %p1282_p7 = scmp.ne.s32.totalorder %s1271_s27, 0 }
 0x1d4   : > { %p1283_p3 = scmp.ge.s32.totalorder %s918_s23, 2  ;;  %s445_s6 = scalar_lea.sflag [#allocation4], %s444_s12 }
 0x1d6   : > { %p644_p13 = pnand %p1283_p3, %p1282_p7 }
 0x1d8   : > { %889 = dma.done.wait (!%p644_p13), %s445_s6, 64  }
 0x1d9   : > { %891 = vsyncadd (!%p644_p13), %s445_s6, 4294967232  ;;  %s1284_s21 = sadd.s32 4294967294, %s918_s23  }
 0x1da   : > { %s453_s14 = sand.u32 1, %s1284_s21  }
 0x1db   : > { %s454_s26 = scalar_lea.sflag [#allocation9], %s453_s14 }
 0x1dc   : > { %893 = dma.done.wait (!%p644_p13), %s454_s26, 128  }
 0x1dd   : > { %895 = vsyncadd (!%p644_p13), %s454_s26, 4294967168  ;;  %s26_s23 = sadd.s32 1, %s918_s23   ;;  %s1285_s18 = smov %s902_s19 }
 0x1de   : > { %p23_p10 = scmp.ge.s32.totalorder %s26_s23, 4   ;;  %s1286_s19 = smov %s906_s20 }
 0x1df   : > { %s1287_s20 = smov %s1064_s13  ;;  %s1288_s21 = smov %s914_s22 }
 0x1e0   : > { %s1289_s22 = smov %s1291_s7  ;;  %25 = sbr.rel (!%p23_p10) target bundleno = 9 (0x9), region = 113 }
 0x1e7   :  { %468 = vsyncpa [#allocation3], 1 }
 0x1e8   :  { %470 = vsyncpa [#allocation3 + $0x1], 1 }
 0x1e9   :  { %471 = vsyncpa [#allocation6], 1 }
 0x1ea   :  { %472 = vsyncpa [#allocation4], 1 }
 0x1eb   :  { %474 = vsyncpa [#allocation4 + $0x1], 1 }
 0x1ec   :  { %475 = vsyncpa [#allocation9], 1 }
 0x1ed   :  { %477 = vsyncpa [#allocation9 + $0x1], 1 }

</bundles_post_ra>
